<compile_context>
chip_gen: v7x
topology: tpu7x:2x2x1
jax: 0.10.0
libtpu: 0.0.40
codegen_flags: <defaults>
</compile_context>

<pallas_src>
import numpy as np

import jax
import jax.numpy as jnp
from jax.experimental import pallas as pl
from jax.experimental.pallas import tpu as pltpu

MAX_BLOCK_ELEMS = 2048 * 512  # 4 MiB f32 per input tile (review: don't go past this on v7x)


def _round_up(x, m):
    return ((x + m - 1) // m) * m


def _num_tensorcores():
    """2 on v7x (2 TCs/chip, 'parallel' leading axis shards work), 1 on v5e/v6e."""
    try:
        kind = jax.devices()[0].device_kind.lower()
    except Exception:
        return 1
    return 2 if "v7" in kind else 1


def _make_kernel(alpha, block_rows, lanes, blocks_per_core):
    inv_denom = 1.0 / (alpha + 1e-4)
    block_elems = block_rows * lanes  # <= 2^20, int32-safe for the block-local index

    def kernel(bidx_ref, valid_ref, pred_ref, true_ref, out_ref, acc_ref):
        c = pl.program_id(0)
        j = pl.program_id(1)

        @pl.when(j == 0)
        def _():
            acc_ref[...] = jnp.zeros_like(acc_ref)

        valid = valid_ref[c * blocks_per_core + j]  # valid elements in this block

        @pl.when(valid > 0)  # phantom / all-pad blocks: DMA happens, compute doesn't
        def _():
            x = pred_ref[...].astype(jnp.float32)
            y = true_ref[...].astype(jnp.float32)

            # nn.BCEWithLogitsLoss(reduction='none'), numerically stable form:
            #   loss = max(x, 0) - x*y + log(1 + exp(-|x|))
            e = jnp.exp(-jnp.abs(x))                       # shared with the sigmoid below
            loss = jnp.maximum(x, 0.0) - x * y + jnp.log(1.0 + e)

            # sigmoid(x) = where(x >= 0, 1, e) / (1 + e); divide -> approx EUP reciprocal
            inv = pl.reciprocal(1.0 + e, approx=True)
            p = jnp.where(x >= 0.0, 1.0, e) * inv
            dx = p - y
            loss = loss * (1.0 - jnp.exp((dx - 1.0) * inv_denom))

            @pl.when(valid == block_elems)                 # interior blocks: unmasked add
            def _():
                acc_ref[...] += loss

            @pl.when(valid < block_elems)                  # trailing partial block only
            def _():
                rows_i = jax.lax.broadcasted_iota(jnp.int32, (block_rows, lanes), 0)
                lane_i = jax.lax.broadcasted_iota(jnp.int32, (block_rows, lanes), 1)
                local = rows_i * lanes + lane_i
                acc_ref[...] += jnp.where(local < valid, loss, 0.0)

        @pl.when(j == pl.num_programs(1) - 1)
        def _():
            out_ref[0, 0] = jnp.sum(acc_ref[...])          # one cross-lane reduce per core

    return kernel


def bce_blur_with_logits_loss(pred, true, alpha=0.05):
    """Scalar f32 loss matching BCEBlurWithLogitsLoss(alpha).forward(pred, true)."""
    assert pred.shape == true.shape
    n = int(np.prod(pred.shape))
    assert n > 0

    # Pick a lane width that divides n so the flattened input reshapes for free (no pad,
    # no slice copy). Only a < lanes residual ever falls back to pure JAX.
    lanes = 512
    for cand in (512, 256, 128):
        if n % cand == 0:
            lanes = cand
            break

    n_main = (n // lanes) * lanes
    n_tail = n - n_main

    pred_flat = pred.reshape(-1)
    true_flat = true.reshape(-1)

    total = jnp.float32(0.0)

    if n_main > 0:
        rows = n_main // lanes
        block_rows = min(MAX_BLOCK_ELEMS // lanes, _round_up(rows, 8))
        block_elems = block_rows * lanes
        total_blocks = -(-rows // block_rows)

        ncores = _num_tensorcores()
        grid_blocks = _round_up(total_blocks, ncores)
        blocks_per_core = grid_blocks // ncores

        if n_tail == 0:
            pred2d = pred_flat.reshape(rows, lanes)        # contiguous reshape: free
            true2d = true_flat.reshape(rows, lanes)
        else:
            # Rare ragged fallback: the lane-aligned prefix may be copied once; still far
            # cheaper than padding both arrays and keeps the kernel's fast path simple.
            pred2d = jax.lax.slice(pred_flat, (0,), (n_main,)).reshape(rows, lanes)
            true2d = jax.lax.slice(true_flat, (0,), (n_main,)).reshape(rows, lanes)

        # Per-block metadata (int32, SMEM scalar prefetch):
        #   valid = number of in-bounds elements in block g (0 for phantom blocks),
        #   bidx  = block index clamped onto the last real block, so every DMA window
        #           intersects the array even when grid_blocks was rounded up to ncores.
        gb = np.arange(grid_blocks, dtype=np.int64)
        valid = jnp.asarray(np.clip(n_main - gb * block_elems, 0, block_elems).astype(np.int32))
        bidx = jnp.asarray(np.minimum(gb, total_blocks - 1).astype(np.int32))

        in_map = lambda c, j, bidx_ref, valid_ref: (bidx_ref[c * blocks_per_core + j], 0)
        out_map = lambda c, j, bidx_ref, valid_ref: (c, 0)

        partials = pl.pallas_call(
            _make_kernel(alpha, block_rows, lanes, blocks_per_core),
            out_shape=jax.ShapeDtypeStruct((ncores, 1), jnp.float32),
            grid_spec=pltpu.PrefetchScalarGridSpec(
                num_scalar_prefetch=2,
                grid=(ncores, blocks_per_core),
                in_specs=[
                    pl.BlockSpec((block_rows, lanes), in_map),
                    pl.BlockSpec((block_rows, lanes), in_map),
                ],
                out_specs=pl.BlockSpec((1, 1), out_map,
                                       memory_space=pltpu.MemorySpace.SMEM),
                scratch_shapes=[pltpu.VMEM((block_rows, lanes), jnp.float32)],
            ),
            compiler_params=pltpu.CompilerParams(
                # TODO(synk): if xprof shows v7x not splitting axis 0 across both
                # TensorCores with plain "parallel", switch axis 0 to pltpu.CORE_PARALLEL.
                dimension_semantics=("parallel", "arbitrary"),
                vmem_limit_bytes=32 << 20,  # ~20 MiB used; fits v7x's 64 MiB physical VMEM
            ),
        )(bidx, valid, pred2d, true2d)

        total = total + jnp.sum(partials)

    if n_tail > 0:
        # < lanes elements: negligible, do them in plain JAX (full-precision math).
        xt = jax.lax.slice(pred_flat, (n_main,), (n,)).astype(jnp.float32)
        yt = jax.lax.slice(true_flat, (n_main,), (n,)).astype(jnp.float32)
        lt = jnp.maximum(xt, 0.0) - xt * yt + jnp.log1p(jnp.exp(-jnp.abs(xt)))
        pt = jax.nn.sigmoid(xt)
        lt = lt * (1.0 - jnp.exp((pt - yt - 1.0) / (alpha + 1e-4)))
        total = total + jnp.sum(lt)

    return total / jnp.float32(n)


def _reference(pred, true, alpha=0.05):
    x = pred.astype(jnp.float32)
    y = true.astype(jnp.float32)
    loss = jnp.maximum(x, 0.0) - x * y + jnp.log1p(jnp.exp(-jnp.abs(x)))
    p = jax.nn.sigmoid(x)
    dx = p - y
    alpha_factor = 1.0 - jnp.exp((dx - 1.0) / (alpha + 1e-4))
    return jnp.mean(loss * alpha_factor)


if __name__ == "__main__":
    key = jax.random.PRNGKey(0)
    k1, k2 = jax.random.split(key)

    # Small NCHW shapes consistent with a detection-head loss input.
    pred = jax.random.normal(k1, (2, 4, 16, 16), dtype=jnp.float32)
    true = (jax.random.uniform(k2, (2, 4, 16, 16)) > 0.5).astype(jnp.float32)

    loss = bce_blur_with_logits_loss(pred, true, alpha=0.05)
    loss = jax.block_until_ready(loss)

    ref = _reference(pred, true, alpha=0.05)
    # Tolerance loosened (5e-3) because of the approx EUP reciprocal in the sigmoid;
    # see the accuracy note at the top of the file.
    assert jnp.allclose(loss, ref, atol=5e-3, rtol=5e-3), (loss, ref)

    print("KERNEL_OK")
</pallas_src>

<mosaic_0001>
module attributes {stable_mosaic.version = 11 : i64} {
  func.func @kernel(%arg0: i32, %arg1: i32, %arg2: memref<1xi32, #tpu.memory_space<smem>>, %arg3: memref<1xi32, #tpu.memory_space<smem>>, %arg4: memref<8x512xf32, #tpu.memory_space<vmem>>, %arg5: memref<8x512xf32, #tpu.memory_space<vmem>>, %arg6: memref<1x1xf32, #tpu.memory_space<smem>>, %arg7: memref<8x512xf32, #tpu.memory_space<vmem>>) attributes {dimension_semantics = [#tpu.dimension_semantics<parallel>, #tpu.dimension_semantics<arbitrary>], iteration_bounds = array<i64: 1, 1>, scalar_prefetch = 2 : i64, scratch_operands = 1 : i64, tpu.core_type = #tpu.core_type<tc>, window_params = [{transform_indices = @transform_0, window_bounds = array<i64: 8, 512>}, {transform_indices = @transform_1, window_bounds = array<i64: 8, 512>}, {transform_indices = @transform_2, window_bounds = array<i64: 1, 1>}]} {
    %c0_i32 = arith.constant 0 : i32
    %0 = arith.cmpi eq, %arg1, %c0_i32 : i32
    %1 = arith.extui %0 : i1 to i32
    %c0_i32_0 = arith.constant 0 : i32
    %2 = arith.cmpi ne, %1, %c0_i32_0 : i32
    scf.if %2 {
      %cst = arith.constant 0.000000e+00 : f32
      %13 = vector.broadcast %cst : f32 to vector<8x512xf32>
      %c0 = arith.constant 0 : index
      %c0_5 = arith.constant 0 : index
      %14 = vector.load %arg7[%c0, %c0_5] : memref<8x512xf32, #tpu.memory_space<vmem>>, vector<8x512xf32>
      tpu.vector_store %arg7[%c0, %c0_5], %13 {strides = array<i32>} : memref<8x512xf32, #tpu.memory_space<vmem>>, vector<8x512xf32>,
    } else {
    }
    %c1_i32 = arith.constant 1 : i32
    %3 = arith.muli %arg0, %c1_i32 : i32
    %4 = arith.addi %3, %arg1 : i32
    %5 = arith.index_cast %4 : i32 to index
    %6 = memref.load %arg3[%5] : memref<1xi32, #tpu.memory_space<smem>>
    %c0_i32_1 = arith.constant 0 : i32
    %7 = arith.cmpi sgt, %6, %c0_i32_1 : i32
    %8 = arith.extui %7 : i1 to i32
    %c0_i32_2 = arith.constant 0 : i32
    %9 = arith.cmpi ne, %8, %c0_i32_2 : i32
    scf.if %9 {
      %c0 = arith.constant 0 : index
      %c0_5 = arith.constant 0 : index
      %13 = vector.load %arg4[%c0, %c0_5] : memref<8x512xf32, #tpu.memory_space<vmem>>, vector<8x512xf32>
      %c0_6 = arith.constant 0 : index
      %c0_7 = arith.constant 0 : index
      %14 = vector.load %arg5[%c0_6, %c0_7] : memref<8x512xf32, #tpu.memory_space<vmem>>, vector<8x512xf32>
      %15 = math.absf %13 : vector<8x512xf32>
      %cst = arith.constant 0.000000e+00 : f32
      %16 = vector.broadcast %cst : f32 to vector<8x512xf32>
      %17 = arith.subf %16, %15 : vector<8x512xf32>
      %18 = math.exp %17 : vector<8x512xf32>
      %cst_8 = arith.constant 0.000000e+00 : f32
      %19 = vector.broadcast %cst_8 : f32 to vector<8x512xf32>
      %20 = arith.maximumf %13, %19 : vector<8x512xf32>
      %21 = arith.mulf %13, %14 : vector<8x512xf32>
      %22 = arith.subf %20, %21 : vector<8x512xf32>
      %cst_9 = arith.constant 1.000000e+00 : f32
      %23 = vector.broadcast %cst_9 : f32 to vector<8x512xf32>
      %24 = arith.addf %23, %18 : vector<8x512xf32>
      %25 = math.log %24 : vector<8x512xf32>
      %26 = arith.addf %22, %25 : vector<8x512xf32>
      %cst_10 = arith.constant 1.000000e+00 : f32
      %27 = vector.broadcast %cst_10 : f32 to vector<8x512xf32>
      %28 = arith.addf %27, %18 : vector<8x512xf32>
      %29 = tpu.reciprocal %28 {approx = true} : vector<8x512xf32> -> vector<8x512xf32>
      %cst_11 = arith.constant 0.000000e+00 : f32
      %30 = vector.broadcast %cst_11 : f32 to vector<8x512xf32>
      %31 = arith.cmpf oge, %13, %30 : vector<8x512xf32>
      %cst_12 = arith.constant 1.000000e+00 : f32
      %32 = vector.broadcast %cst_12 : f32 to vector<8x512xf32>
      %33 = arith.select %31, %32, %18 : vector<8x512xi1>, vector<8x512xf32>
      %34 = arith.mulf %33, %29 : vector<8x512xf32>
      %35 = arith.subf %34, %14 : vector<8x512xf32>
      %cst_13 = arith.constant 1.000000e+00 : f32
      %36 = vector.broadcast %cst_13 : f32 to vector<8x512xf32>
      %37 = arith.subf %35, %36 : vector<8x512xf32>
      %cst_14 = arith.constant 19.9600792 : f32
      %38 = vector.broadcast %cst_14 : f32 to vector<8x512xf32>
      %39 = arith.mulf %37, %38 : vector<8x512xf32>
      %40 = math.exp %39 : vector<8x512xf32>
      %cst_15 = arith.constant 1.000000e+00 : f32
      %41 = vector.broadcast %cst_15 : f32 to vector<8x512xf32>
      %42 = arith.subf %41, %40 : vector<8x512xf32>
      %43 = arith.mulf %26, %42 : vector<8x512xf32>
      %c4096_i32 = arith.constant 4096 : i32
      %44 = arith.cmpi eq, %6, %c4096_i32 : i32
      %45 = arith.extui %44 : i1 to i32
      %c0_i32_16 = arith.constant 0 : i32
      %46 = arith.cmpi ne, %45, %c0_i32_16 : i32
      scf.if %46 {
        %c0_19 = arith.constant 0 : index
        %c0_20 = arith.constant 0 : index
        %50 = vector.load %arg7[%c0_19, %c0_20] : memref<8x512xf32, #tpu.memory_space<vmem>>, vector<8x512xf32>
        %51 = arith.addf %50, %43 : vector<8x512xf32>
        %c0_21 = arith.constant 0 : index
        %c0_22 = arith.constant 0 : index
        %52 = vector.load %arg7[%c0_21, %c0_22] : memref<8x512xf32, #tpu.memory_space<vmem>>, vector<8x512xf32>
        tpu.vector_store %arg7[%c0_21, %c0_22], %51 {strides = array<i32>} : memref<8x512xf32, #tpu.memory_space<vmem>>, vector<8x512xf32>,
      } else {
      }
      %c4096_i32_17 = arith.constant 4096 : i32
      %47 = arith.cmpi slt, %6, %c4096_i32_17 : i32
      %48 = arith.extui %47 : i1 to i32
      %c0_i32_18 = arith.constant 0 : i32
      %49 = arith.cmpi ne, %48, %c0_i32_18 : i32
      scf.if %49 {
        %50 = tpu.iota {dimensions = array<i32: 0>} : vector<8x512xi32>
        %51 = tpu.iota {dimensions = array<i32: 1>} : vector<8x512xi32>
        %c512_i32 = arith.constant 512 : i32
        %52 = vector.broadcast %c512_i32 : i32 to vector<8x512xi32>
        %53 = arith.muli %50, %52 : vector<8x512xi32>
        %54 = arith.addi %53, %51 : vector<8x512xi32>
        %c0_19 = arith.constant 0 : index
        %c0_20 = arith.constant 0 : index
        %55 = vector.load %arg7[%c0_19, %c0_20] : memref<8x512xf32, #tpu.memory_space<vmem>>, vector<8x512xf32>
        %56 = vector.broadcast %6 : i32 to vector<8x512xi32>
        %57 = arith.cmpi slt, %54, %56 : vector<8x512xi32>
        %cst_21 = arith.constant 0.000000e+00 : f32
        %58 = vector.broadcast %cst_21 : f32 to vector<8x512xf32>
        %59 = arith.select %57, %43, %58 : vector<8x512xi1>, vector<8x512xf32>
        %60 = arith.addf %55, %59 : vector<8x512xf32>
        %c0_22 = arith.constant 0 : index
        %c0_23 = arith.constant 0 : index
        %61 = vector.load %arg7[%c0_22, %c0_23] : memref<8x512xf32, #tpu.memory_space<vmem>>, vector<8x512xf32>
        tpu.vector_store %arg7[%c0_22, %c0_23], %60 {strides = array<i32>} : memref<8x512xf32, #tpu.memory_space<vmem>>, vector<8x512xf32>,
      } else {
      }
    } else {
    }
    %c0_i32_3 = arith.constant 0 : i32
    %10 = arith.cmpi eq, %arg1, %c0_i32_3 : i32
    %11 = arith.extui %10 : i1 to i32
    %c0_i32_4 = arith.constant 0 : i32
    %12 = arith.cmpi ne, %11, %c0_i32_4 : i32
    scf.if %12 {
      %c0 = arith.constant 0 : index
      %c0_5 = arith.constant 0 : index
      %13 = vector.load %arg7[%c0, %c0_5] : memref<8x512xf32, #tpu.memory_space<vmem>>, vector<8x512xf32>
      %14 = vector.shape_cast %13 : vector<8x512xf32> to vector<1x8x512xf32>
      %cst = arith.constant dense<0.000000e+00> : vector<1xf32>
      %15 = vector.multi_reduction <add>, %14, %cst [1, 2] : vector<1x8x512xf32> to vector<1xf32>
      %16 = vector.shape_cast %15 : vector<1xf32> to vector<1x1x1xf32>
      %17 = vector.extract %16[0, 0, 0] : f32 from vector<1x1x1xf32>
      %c0_6 = arith.constant 0 : index
      %c0_7 = arith.constant 0 : index
      %18 = memref.load %arg6[%c0_6, %c0_7] : memref<1x1xf32, #tpu.memory_space<smem>>
      memref.store %17, %arg6[%c0_6, %c0_7] : memref<1x1xf32, #tpu.memory_space<smem>>
    } else {
    }
    return
  }
  func.func @transform_0(%arg0: i32, %arg1: i32, %arg2: memref<1xi32, #tpu.memory_space<smem>>, %arg3: memref<1xi32, #tpu.memory_space<smem>>) -> (i32, i32) {
    %c1_i32 = arith.constant 1 : i32
    %0 = arith.muli %arg0, %c1_i32 : i32
    %1 = arith.addi %0, %arg1 : i32
    %2 = arith.index_cast %1 : i32 to index
    %3 = memref.load %arg2[%2] : memref<1xi32, #tpu.memory_space<smem>>
    %c0_i32 = arith.constant 0 : i32
    %c0_i32_0 = arith.constant 0 : i32
    return %3, %c0_i32 : i32, i32
  }
  func.func @transform_1(%arg0: i32, %arg1: i32, %arg2: memref<1xi32, #tpu.memory_space<smem>>, %arg3: memref<1xi32, #tpu.memory_space<smem>>) -> (i32, i32) {
    %c1_i32 = arith.constant 1 : i32
    %0 = arith.muli %arg0, %c1_i32 : i32
    %1 = arith.addi %0, %arg1 : i32
    %2 = arith.index_cast %1 : i32 to index
    %3 = memref.load %arg2[%2] : memref<1xi32, #tpu.memory_space<smem>>
    %c0_i32 = arith.constant 0 : i32
    %c0_i32_0 = arith.constant 0 : i32
    return %3, %c0_i32 : i32, i32
  }
  func.func @transform_2(%arg0: i32, %arg1: i32, %arg2: memref<1xi32, #tpu.memory_space<smem>>, %arg3: memref<1xi32, #tpu.memory_space<smem>>) -> (i32, i32) {
    %c0_i32 = arith.constant 0 : i32
    %c0_i32_0 = arith.constant 0 : i32
    return %arg0, %c0_i32 : i32, i32
  }
}

</mosaic_0001>

<bundles_post_ra>
// kernel: tpu_custom_call.1
= control target key start
LH: loop header
LB: loop body
LE: loop exit
PB: predicated region body
PF: predicated region fallthrough
CT: control target
= control target key end

     0   :  { %11 = vsyncpa [#allocation7], 0  ;;  %s611_s0 = inlined_call_operand.<no memory space> [shape: s32[1], index: 0, kind: input, shape index: {}]   ;;  %s612_s1 = inlined_call_operand.<no memory space> [shape: s32[1], index: 1, kind: input, shape index: {}]   ;;  %s613_s2 = inlined_call_operand.hbm [shape: f32[4,512], index: 2, kind: input, shape index: {}]   ;;  %s614_s3 = inlined_call_operand.hbm [shape: f32[4,512], index: 3, kind: input, shape index: {}]   ;;  %s615_s4 = inlined_call_operand.hbm [shape: f32[1,1], index: 4, kind: output, shape index: {}]  }
   0x1   :  { %12 = vsyncpa [#allocation10], 0 }
   0x2   :  { %13 = vsyncpa [#allocation8], 0  ;;  %s305_s17 = sshll.u32 %s611_s0, 1 }
   0x3   :  { %s19_s18 = ssub.s32 1, %s305_s17 }
   0x4   :  { %s480_s19 = sshll.u32 %s19_s18, 8 }
   0x5   :  { %s23_s20 = ssub.s32 512, %s480_s19 }
   0x6   :  { %24 = vsyncadd [#allocation7], %s23_s20  ;;  %p308_p0 = scmp.ne.s32.totalorder %s480_s19, 0  ;;  %s330_s23 = sshll.u32 %s611_s0, 9 }
   0x7   :  { %s496_s28 = scalar_lea.hbm %s613_s2, %s330_s23  ;;  %s446_s29 = smov [#allocation6]  }
   0x8   :  { %s30_s30 = sshll.u32 %s446_s29, 4  ;;  %s374_s5 = scalar_lea.hbm %s496_s28, %s480_s19  ;;  %s498_s30 = int_to_ptr.vmem [resolvable:$true] %s30_s30 }
   0x9   :  { %p375_p1 = scmp.ne.s32.totalorder %s496_s28, %s374_s5  ;;  %s378_s8 = scalar_lea.hbm %s613_s2, 256 }
   0xa   :  { %p379_p4 = scmp.lt.u32.totalorder %s496_s28, %s613_s2  ;;  %p380_p5 = scmp.lt.u32.totalorder %s378_s8, %s374_s5 }
   0xb   :  { %p376_p2 = pnand %p375_p1, %p308_p0  ;;  %p382_p7 = scmp.lt.u32.totalorder %s374_s5, %s496_s28 }
   0xc   :  { %p381_p6 = por %p380_p5, %p379_p4 }
   0xd   :  { %p377_p3 = pneg %p376_p2 }
   0xe   :  { %p383_p8 = por %p382_p7, %p381_p6 }
  0x10   :  { %p384_p9 = pnand %p383_p8, %p377_p3 }
  0x12   :  { %387 = shalt.err (!%p384_p9)
}
  0x13   :  { %s388_s11 = scalar_lea.vmem %s498_s30, %s480_s19  ;;  %s394_s12 = scalar_lea.vmem %s498_s30, 512 }
  0x14   :  { %p389_p10 = scmp.ne.s32.totalorder %s498_s30, %s388_s11  ;;  %p395_p13 = scmp.lt.s32.totalorder %s498_s30, %s498_s30 }
  0x15   :  { %p396_p1 = scmp.lt.s32.totalorder %s394_s12, %s388_s11 }
  0x16   :  { %p390_p11 = pnand %p389_p10, %p308_p0 }
  0x17   :  { %p397_p2 = por %p396_p1, %p395_p13 }
  0x18   :  { %p391_p12 = pneg %p390_p11 }
  0x1a   :  { %p398_p4 = pnand %p397_p2, %p391_p12 }
  0x1c   :  { %401 = shalt.err (!%p398_p4)
}
  0x1d   :  { %s447_s2 = smov 256   ;;  %s448_s13 = smov 16  }
  0x1e   :  { %36 = dma.hbm_to_vmem [thread:$0]  (%p308_p0), %s496_s28, %s480_s19, %s498_s30, [#allocation7], %s447_s2, %s447_s2, %s448_s13  }
  0x1f   :  { %47 = vsyncadd [#allocation10], %s23_s20  ;;  %s538_s18 = scalar_lea.hbm %s614_s3, %s330_s23  ;;  %s449_s21 = smov [#allocation9]  }
  0x20   :  { %s53_s22 = sshll.u32 %s449_s21, 4  ;;  %s402_s24 = scalar_lea.hbm %s538_s18, %s480_s19  ;;  %s54_s22 = int_to_ptr.vmem [resolvable:$true] %s53_s22 }
  0x21   :  { %p403_p3 = scmp.ne.s32.totalorder %s538_s18, %s402_s24  ;;  %s406_s25 = scalar_lea.hbm %s614_s3, 256 }
  0x22   :  { %p407_p7 = scmp.lt.u32.totalorder %s538_s18, %s614_s3  ;;  %p408_p8 = scmp.lt.u32.totalorder %s406_s25, %s402_s24 }
  0x23   :  { %p404_p5 = pnand %p403_p3, %p308_p0  ;;  %p410_p10 = scmp.lt.u32.totalorder %s402_s24, %s538_s18 }
  0x24   :  { %p409_p9 = por %p408_p8, %p407_p7 }
  0x25   :  { %p405_p6 = pneg %p404_p5 }
  0x26   :  { %p411_p11 = por %p410_p10, %p409_p9 }
  0x28   :  { %p412_p12 = pnand %p411_p11, %p405_p6 }
  0x2a   :  { %415 = shalt.err (!%p412_p12)
}
  0x2b   :  { %s416_s23 = scalar_lea.vmem %s54_s22, %s480_s19  ;;  %s422_s28 = scalar_lea.vmem %s54_s22, 512 }
  0x2c   :  { %p417_p13 = scmp.ne.s32.totalorder %s54_s22, %s416_s23  ;;  %p423_p4 = scmp.lt.s32.totalorder %s54_s22, %s54_s22 }
  0x2d   :  { %p424_p3 = scmp.lt.s32.totalorder %s422_s28, %s416_s23 }
  0x2e   :  { %p418_p1 = pnand %p417_p13, %p308_p0 }
  0x2f   :  { %p425_p5 = por %p424_p3, %p423_p4 }
  0x30   :  { %p419_p2 = pneg %p418_p1 }
  0x32   :  { %p426_p7 = pnand %p425_p5, %p419_p2 }
  0x34   :  { %429 = shalt.err (!%p426_p7)
}
  0x35   :  { %59 = dma.hbm_to_vmem [thread:$0]  (%p308_p0), %s538_s18, %s480_s19, %s54_s22, [#allocation10], %s447_s2, %s447_s2, %s448_s13  }
  0x36   :  { %440 = dma.done.wait [#allocation7], 512  }
  0x37   :  { %441 = vsyncadd [#allocation7], 4294966784 }
  0x38   :  { %442 = dma.done.wait [#allocation10], 512  }
  0x39   :  { %443 = vsyncadd [#allocation10], 4294966784  ;;  %v450_v0 = vmov 0.0   ;;  %p321_p6 = scmp.le.s32.totalorder %s612_s1, 0 }
  0x3a   :  { %82 = vst [vmem:[#allocation2] sm:$0xff] %v450_v0  ;;  %83 = vst [vmem:[#allocation2 + $0x8] sm:$0xff] %v450_v0  ;;  %v566_v1 = vld [vmem:[#allocation6] sm:$0xff] (!%p321_p6)  ;;  %v568_v2 = vld [vmem:[#allocation6 + $0x8] sm:$0xff] (!%p321_p6)  ;;  %p326_p0 = scmp.ne.s32.totalorder (!%p321_p6), %s612_s1, 4096 }
  0x3b   :  { %84 = vst [vmem:[#allocation2 + $0x10] sm:$0xff] %v450_v0  ;;  %85 = vst [vmem:[#allocation2 + $0x18] sm:$0xff] %v450_v0  ;;  %91 = sbr.rel (%p321_p6) target bundleno = 138 (0x8a), region = 25  ;;  %v570_v3 = vld [vmem:[#allocation6 + $0x10] sm:$0xff] (!%p321_p6)  ;;  %v572_v4 = vld [vmem:[#allocation6 + $0x18] sm:$0xff] (!%p321_p6)  ;;  %vm148_vm0 = vcmp.ge.f32.partialorder (!%p321_p6), %v566_v1, 0.0 }
  0x3c   :  { %v100_v5 = vand.u32 (!%p321_p6), 2147483647, %v566_v1  ;;  %v101_v6 = vand.u32 (!%p321_p6), 2147483647, %v568_v2  ;;  %v102_v7 = vand.u32 (!%p321_p6), 2147483647, %v570_v3 }
  0x3d   :  { %v103_v8 = vand.u32 (!%p321_p6), 2147483647, %v572_v4  ;;  %vm149_vm1 = vcmp.ge.f32.partialorder (!%p321_p6), %v568_v2, 0.0  ;;  %vm150_vm2 = vcmp.ge.f32.partialorder (!%p321_p6), %v570_v3, 0.0  ;;  %vm151_vm3 = vcmp.ge.f32.partialorder (!%p321_p6), %v572_v4, 0.0  ;;  %v96_v28 = vld [vmem:[#allocation9] sm:$0xff] (!%p321_p6) }
  0x3e   :  { %v104_v9 = vsub.f32 (!%p321_p6), 0.0, %v100_v5  ;;  %v105_v10 = vsub.f32 (!%p321_p6), 0.0, %v101_v6  ;;  %v106_v11 = vsub.f32 (!%p321_p6), 0.0, %v102_v7  ;;  %v97_v31 = vld [vmem:[#allocation9 + $0x8] sm:$0xff] (!%p321_p6)  ;;  %v98_v35 = vld [vmem:[#allocation9 + $0x10] sm:$0xff] (!%p321_p6)  ;;  %v99_v38 = vld [vmem:[#allocation9 + $0x18] sm:$0xff] (!%p321_p6)  ;;  %v120_v57 = vmul.f32 (!%p321_p6), %v96_v28, %v566_v1 }
  0x3f   :  { %v107_v12 = vsub.f32 (!%p321_p6), 0.0, %v103_v8  ;;  %v116_v56 = vmax.f32 (!%p321_p6), %v566_v1, 0.0  ;;  %v117_v60 = vmax.f32 (!%p321_p6), %v568_v2, 0.0  ;;  %v121_v61 = vmul.f32 (!%p321_p6), %v97_v31, %v568_v2 }
  0x40   :  { %v108_v13 = vmul.f32 (!%p321_p6), 1.442695, %v104_v9  ;;  %v110_v14 = vmul.f32 (!%p321_p6), 1.442695, %v105_v10  ;;  %v112_v15 = vmul.f32 (!%p321_p6), 1.442695, %v106_v11  ;;  %v122_v0 = vmul.f32 (!%p321_p6), %v98_v35, %v570_v3 }
  0x41   :  { %v114_v16 = vmul.f32 (!%p321_p6), 1.442695, %v107_v12  ;;  %v118_v63 = vmax.f32 (!%p321_p6), %v570_v3, 0.0  ;;  %v119_v6 = vmax.f32 (!%p321_p6), %v572_v4, 0.0  ;;  %v123_v7 = vmul.f32 (!%p321_p6), %v99_v38, %v572_v4 }
  0x42   :  { %342 = vpow2.f32 %v108_v13  ;;  %v124_v8 = vsub.f32 %v116_v56, %v120_v57  ;;  %v125_v10 = vsub.f32 %v117_v60, %v121_v61 }
  0x43   :  { %344 = vpow2.f32 %v110_v14  ;;  %v126_v12 = vsub.f32 %v118_v63, %v122_v0  ;;  %v127_v2 = vsub.f32 %v119_v6, %v123_v7 }
  0x44   :  { %346 = vpow2.f32 %v112_v15 }
  0x45   :  { %348 = vpow2.f32 %v114_v16 }
  0x4c   :  { %v343_v17 = vpop.eup %342 }
  0x4d   :  { %v345_v18 = vpop.eup %344  ;;  %v128_v21 = vadd.f32 1.0, %v343_v17  ;;  %v152_v25 = vsel %vm148_vm0, 1.0, %v343_v17 }
  0x4e   :  { %v347_v19 = vpop.eup %346  ;;  %v129_v22 = vadd.f32 1.0, %v345_v18  ;;  %v153_v26 = vsel %vm149_vm1, 1.0, %v345_v18 }
  0x4f   :  { %v349_v20 = vpop.eup %348  ;;  %v130_v23 = vadd.f32 1.0, %v347_v19  ;;  %350 = vrcp.f32 %v128_v21  ;;  %v154_v29 = vsel %vm150_vm2, 1.0, %v347_v19 }
  0x50   :  { %v131_v24 = vadd.f32 1.0, %v349_v20  ;;  %352 = vrcp.f32 %v129_v22  ;;  %v155_v32 = vsel %vm151_vm3, 1.0, %v349_v20 }
  0x51   :  { %354 = vrcp.f32 %v130_v23 }
  0x52   :  { %356 = vrcp.f32 %v131_v24 }
  0x53   :  { %358 = vlog2.f32 %v128_v21 }
  0x54   :  { %360 = vlog2.f32 %v129_v22 }
  0x55   :  { %362 = vlog2.f32 %v130_v23 }
  0x56   :  { %364 = vlog2.f32 %v131_v24 }
  0x59   :  { %v351_v27 = vpop.eup %350 }
  0x5a   :  { %v353_v30 = vpop.eup %352  ;;  %v156_v33 = vmul.f32 %v351_v27, %v152_v25 }
  0x5b   :  { %v355_v34 = vpop.eup %354  ;;  %v157_v36 = vmul.f32 %v353_v30, %v153_v26 }
  0x5c   :  { %v357_v37 = vpop.eup %356  ;;  %v158_v39 = vmul.f32 %v355_v34, %v154_v29  ;;  %v160_v40 = vsub.f32 %v156_v33, %v96_v28  ;;  %v192_v29 = vld [vmem:[#allocation2] sm:$0xff] (!%p326_p0)  ;;  %v194_v33 = vld [vmem:[#allocation2 + $0x10] sm:$0xff] (!%p326_p0) }
  0x5d   :  { %v159_v41 = vmul.f32 %v357_v37, %v155_v32  ;;  %v161_v42 = vsub.f32 %v157_v36, %v97_v31  ;;  %v359_v59 = vpop.eup %358  ;;  %v193_v31 = vld [vmem:[#allocation2 + $0x8] sm:$0xff] (!%p326_p0)  ;;  %v195_v36 = vld [vmem:[#allocation2 + $0x18] sm:$0xff] (!%p326_p0) }
  0x5e   :  { %v162_v43 = vsub.f32 %v158_v39, %v98_v35  ;;  %v322_v44 = vadd.f32 -1.0, %v160_v40  ;;  %v361_v62 = vpop.eup %360  ;;  %v133_v9 = vmul.f32 0.6931472, %v359_v59 }
  0x5f   :  { %v163_v45 = vsub.f32 %v159_v41, %v99_v38  ;;  %v323_v46 = vadd.f32 -1.0, %v161_v42  ;;  %v363_v5 = vpop.eup %362  ;;  %v135_v11 = vmul.f32 0.6931472, %v361_v62 }
  0x60   :  { %v324_v47 = vadd.f32 -1.0, %v162_v43  ;;  %v168_v48 = vmul.f32 19.96008, %v322_v44  ;;  %v365_v1 = vpop.eup %364  ;;  %v137_v13 = vmul.f32 0.6931472, %v363_v5  ;;  %v140_v15 = vadd.f32 %v133_v9, %v124_v8 }
  0x61   :  { %v325_v49 = vadd.f32 -1.0, %v163_v45  ;;  %v169_v50 = vmul.f32 19.96008, %v323_v46  ;;  %v139_v14 = vmul.f32 0.6931472, %v365_v1  ;;  %v141_v17 = vadd.f32 %v135_v11, %v125_v10 }
  0x62   :  { %v170_v51 = vmul.f32 19.96008, %v324_v47  ;;  %v172_v52 = vmul.f32 1.442695, %v168_v48  ;;  %v142_v3 = vadd.f32 %v137_v13, %v126_v12 }
  0x63   :  { %v171_v53 = vmul.f32 19.96008, %v325_v49  ;;  %v174_v54 = vmul.f32 1.442695, %v169_v50  ;;  %v143_v21 = vadd.f32 %v139_v14, %v127_v2 }
  0x64   :  { %366 = vpow2.f32 %v172_v52  ;;  %v176_v55 = vmul.f32 1.442695, %v170_v51 }
  0x65   :  { %368 = vpow2.f32 %v174_v54  ;;  %v178_v58 = vmul.f32 1.442695, %v171_v53 }
  0x66   :  { %370 = vpow2.f32 %v176_v55 }
  0x67   :  { %372 = vpow2.f32 %v178_v58 }
  0x6e   :  { %v367_v16 = vpop.eup %366  ;;  %191 = sbr.rel (%p326_p0) target bundleno = 123 (0x7b), region = 29 }
  0x6f   :  { %v369_v18 = vpop.eup %368  ;;  %v180_v19 = vsub.f32 1.0, %v367_v16 }
  0x70   :  { %v371_v20 = vpop.eup %370  ;;  %v181_v22 = vsub.f32 1.0, %v369_v18 }
  0x71   :  { %v373_v23 = vpop.eup %372  ;;  %v182_v4 = vsub.f32 1.0, %v371_v20  ;;  %v184_v24 = vmul.f32 %v180_v19, %v140_v15 }
  0x72   :  { %v183_v25 = vsub.f32 1.0, %v373_v23  ;;  %v185_v26 = vmul.f32 %v181_v22, %v141_v17 }
  0x73   :  { %v186_v27 = vmul.f32 %v182_v4, %v142_v3 }
  0x74   :  { %v187_v28 = vmul.f32 %v183_v25, %v143_v21 }
  0x75   :  { %v200_v30 = vcombine.low %v184_v24, %v186_v27  ;;  %v201_v32 = vcombine.high %v184_v24, %v186_v27 }
  0x76   :  { %v202_v34 = vcombine.low %v185_v26, %v187_v28  ;;  %v203_v35 = vcombine.high %v185_v26, %v187_v28 }
  0x77   :  { %v208_v37 = vadd.f32 %v200_v30, %v192_v29  ;;  %v209_v38 = vadd.f32 %v201_v32, %v193_v31 }
  0x78   :  { %v210_v39 = vadd.f32 %v202_v34, %v194_v33  ;;  %v211_v40 = vadd.f32 %v203_v35, %v195_v36 }
  0x79   :  { %212 = vst [vmem:[#allocation2] sm:$0xff] %v208_v37  ;;  %213 = vst [vmem:[#allocation2 + $0x8] sm:$0xff] %v209_v38 }
  0x7a   :  { %214 = vst [vmem:[#allocation2 + $0x10] sm:$0xff] %v210_v39  ;;  %215 = vst [vmem:[#allocation2 + $0x18] sm:$0xff] %v211_v40 }
  0x7b PF:  { %p327_p8 = scmp.ge.s32.totalorder %s612_s1, 4096 }
  0x7c   :  { %v220_v41 = vlaneseq (!%p327_p8)  ;;  %v236_v44 = vstv (!%p327_p8), %s612_s1  ;;  %v245_v49 = vcombine.low (!%p327_p8), %v184_v24, %v186_v27  ;;  %v246_v50 = vcombine.high (!%p327_p8), %v184_v24, %v186_v27 }
  0x7d   :  { %219 = sbr.rel (%p327_p8) target bundleno = 138 (0x8a), region = 33  ;;  %v247_v51 = vcombine.low (!%p327_p8), %v185_v26, %v187_v28  ;;  %v248_v52 = vcombine.high (!%p327_p8), %v185_v26, %v187_v28 }
  0x7e   :  { %v221_v42 = vshrl.u32 (!%p327_p8), %v220_v41, 7  ;;  %v223_v43 = vand.u32 (!%p327_p8), 127, %v220_v41 }
  0x80   :  { %v227_v45 = vmul.u32 (!%p327_p8), 512, %v221_v42  ;;  %v224_v46 = vadd.s32 (!%p327_p8), 128, %v223_v43  ;;  %v225_v47 = vadd.s32 (!%p327_p8), 256, %v223_v43  ;;  %v226_v48 = vadd.s32 (!%p327_p8), 384, %v223_v43  ;;  %v232_v54 = vld [vmem:[#allocation2] sm:$0xff] (!%p327_p8)  ;;  %v233_v58 = vld [vmem:[#allocation2 + $0x8] sm:$0xff] (!%p327_p8) }
  0x81   :  { %v234_v59 = vld [vmem:[#allocation2 + $0x10] sm:$0xff] (!%p327_p8)  ;;  %v235_v60 = vld [vmem:[#allocation2 + $0x18] sm:$0xff] (!%p327_p8) }
  0x82   :  { %v228_v53 = vadd.s32 (!%p327_p8), %v227_v45, %v223_v43  ;;  %v229_v55 = vadd.s32 (!%p327_p8), %v227_v45, %v224_v46  ;;  %v230_v56 = vadd.s32 (!%p327_p8), %v227_v45, %v225_v47  ;;  %v231_v57 = vadd.s32 (!%p327_p8), %v227_v45, %v226_v48 }
  0x84   :  { %vm237_vm4 = vcmp.lt.s32.totalorder %v228_v53, %v236_v44  ;;  %vm238_vm5 = vcmp.lt.s32.totalorder %v229_v55, %v236_v44  ;;  %vm239_vm6 = vcmp.lt.s32.totalorder %v230_v56, %v236_v44  ;;  %vm240_vm7 = vcmp.lt.s32.totalorder %v231_v57, %v236_v44 }
  0x85   :  { %v253_v61 = vsel %vm237_vm4, %v245_v49, 0.0  ;;  %v254_v62 = vsel %vm238_vm5, %v246_v50, 0.0  ;;  %v255_v63 = vsel %vm239_vm6, %v247_v51, 0.0  ;;  %v256_v0 = vsel %vm240_vm7, %v248_v52, 0.0 }
  0x86   :  { %v257_v5 = vadd.f32 %v253_v61, %v232_v54  ;;  %v258_v6 = vadd.f32 %v254_v62, %v233_v58  ;;  %v259_v7 = vadd.f32 %v255_v63, %v234_v59  ;;  %v260_v1 = vadd.f32 %v256_v0, %v235_v60 }
  0x88   :  { %261 = vst [vmem:[#allocation2] sm:$0xff] %v257_v5  ;;  %262 = vst [vmem:[#allocation2 + $0x8] sm:$0xff] %v258_v6 }
  0x89   :  { %263 = vst [vmem:[#allocation2 + $0x10] sm:$0xff] %v259_v7  ;;  %264 = vst [vmem:[#allocation2 + $0x18] sm:$0xff] %v260_v1 }
  0x8a PF:  { %s430_s11 = scalar_lea.hbm %s615_s4, 16 }
  0x8b   :  { %p431_p9 = scmp.ne.s32.totalorder %s615_s4, %s430_s11  ;;  %p434_p10 = scmp.lt.u32.totalorder %s430_s11, %s615_s4 }
  0x8d   :  { %p436_p11 = pnand %p434_p10, %p431_p9 }
  0x8f   :  { %v268_v8 = vld [vmem:[#allocation2] sm:$0xff]  ;;  %v269_v9 = vld [vmem:[#allocation2 + $0x8] sm:$0xff] }
  0x90   :  { %v270_v10 = vld [vmem:[#allocation2 + $0x10] sm:$0xff]  ;;  %v272_v11 = vadd.f32 %v269_v9, %v268_v8  ;;  %v271_v12 = vld [vmem:[#allocation2 + $0x18] sm:$0xff] }
  0x92   :  { %v273_v13 = vadd.f32 %v272_v11, %v270_v10 }
  0x94   :  { %v274_v2 = vadd.f32 %v273_v13, %v271_v12 }
  0x96   :  { %275 = vadd.xlane.f32.xlu0 %v274_v2 }
 0x123   :  { %v276_v14 = vpop.xlane.xlu0 %275 }
 0x124   :  { %v277_v15 = vrot.slane %v276_v14, 4 }
 0x126   :  { %v278_v16 = vadd.f32 %v277_v15, %v276_v14 }
 0x128   :  { %v279_v17 = vrot.slane %v278_v16, 2 }
 0x12a   :  { %v280_v18 = vadd.f32 %v279_v17, %v278_v16 }
 0x12c   :  { %v281_v3 = vrot.slane %v280_v18, 1 }
 0x12e   :  { %v282_v19 = vadd.f32 %v281_v3, %v280_v18 }
 0x130   :  { %334 = vpush %v282_v19 }
 0x161   :  { %s335_s1 = spop %334 }
 0x162   :  { %285 = sst [smem:[#allocation11]] %s335_s1 }
 0x163   :  { %439 = shalt.err (!%p436_p11)
}
 0x164   :  { %s451_s15 = smov [#allocation11]  }
 0x165   :  { %293 = dma.smem_to_hbm %s451_s15, 16, %s615_s4, [#allocation8]  }
 0x166   :  { %444 = dma.done.wait [#allocation8], 16  }
 0x167   :  { %445 = vsyncadd [#allocation8], 4294967280 }
 0x168   :  { %297 = sfence }
 0x169   :  { %298 = vsyncpa [#allocation7], 1 }
 0x16a   :  { %299 = vsyncpa [#allocation10], 1 }
 0x16b   :  { %300 = vsyncpa [#allocation8], 1 }

</bundles_post_ra>
